<compile_context>
chip_gen: v7x
topology: tpu7x:2x2x1
jax: 0.10.0
libtpu: 0.0.40
codegen_flags: <defaults>
</compile_context>

<pallas_src>
import jax
import jax.numpy as jnp
from jax.experimental import pallas as pl
from jax.experimental.pallas import tpu as pltpu


def _round_up(v, m):
    return ((v + m - 1) // m) * m


def sage_kernel(adj_ref, xr_ref, xk_ref, wx_ref, wa_ref, b_ref, o_ref,
                acc_ref, deg_ref):
    k = pl.program_id(1)

    @pl.when(k == 0)
    def _():
        acc_ref[...] = jnp.zeros_like(acc_ref)
        deg_ref[...] = jnp.zeros_like(deg_ref)

    adj = adj_ref[...]                                            # (tm, tk) bf16, exact 0/1
    # Row-degree partial sum (f32 so large degrees stay exact).
    deg_ref[...] += jnp.sum(adj.astype(jnp.float32), axis=-1, keepdims=True)
    # spmm partial sum: bf16 x bf16 MXU, f32 accumulate.
    acc_ref[...] += jnp.dot(adj, xk_ref[...],
                            preferred_element_type=jnp.float32)   # (tm, F)

    @pl.when(k == pl.num_programs(1) - 1)
    def _():
        deg = deg_ref[...]                                        # (tm, 1)
        # EUP reciprocal (free slot); isolated-node guard selects 0.
        inv_deg = jnp.where(deg > 0.0, pl.reciprocal(deg, approx=True), 0.0)
        agg = acc_ref[...] * inv_deg                              # (tm, F) f32 mean-agg

        out = (jnp.dot(xr_ref[...], wx_ref[...], preferred_element_type=jnp.float32)
               + jnp.dot(agg, wa_ref[...], preferred_element_type=jnp.float32)
               + b_ref[...])                                      # (tm, O_pad)
        o_ref[...] = out.astype(o_ref.dtype)


def prepare_params(w, b):
    """One-time prep of nn.Linear(2F, O) params: split, transpose, lane-pad to 128.

    w: (O, 2F) torch Linear layout, b: (O,).
    Returns wx_p (F, O_pad), wa_p (F, O_pad), b_p (1, O_pad), O.
    """
    O, two_f = w.shape
    F = two_f // 2
    O_pad = _round_up(O, 128)
    wx_p = jnp.zeros((F, O_pad), jnp.float32).at[:, :O].set(
        jnp.asarray(w[:, :F], jnp.float32).T)
    wa_p = jnp.zeros((F, O_pad), jnp.float32).at[:, :O].set(
        jnp.asarray(w[:, F:], jnp.float32).T)
    b_p = jnp.zeros((1, O_pad), jnp.float32).at[:, :O].set(
        jnp.asarray(b, jnp.float32).reshape(1, O))
    return wx_p, wa_p, b_p, O


def sage_layer_forward(adj, x, wx_p, wa_p, b_p, out_feats, *, tm=256, tk=512):
    """adj: (N, N) dense adjacency (0/1), x: (N, F) f32, pre-prepped padded params."""
    N, F = x.shape
    assert adj.shape == (N, N)
    O_pad = wx_p.shape[1]
    assert wa_p.shape == (F, O_pad) and b_p.shape == (1, O_pad)

    # Tile constraints: sublane (rows) multiple of 8, lane (cols) multiple of 128.
    assert tm % 8 == 0 and tk % 128 == 0
    assert max(tm, tk) % min(tm, tk) == 0, "tm/tk must nest so one padding works"
    N_pad = _round_up(N, max(tm, tk, 128))

    # Pad graph (zero rows/cols -> deg 0 -> agg 0; padded rows are sliced off).
    # Adjacency streamed as bf16 (exact for 0/1) to halve HBM/VMEM traffic.
    adj_pad = jnp.zeros((N_pad, N_pad), jnp.bfloat16).at[:N, :N].set(
        adj.astype(jnp.bfloat16))
    x_pad = jnp.zeros((N_pad, F), jnp.float32).at[:N, :].set(
        x.astype(jnp.float32))
    xk_pad = x_pad.astype(jnp.bfloat16)        # bf16 stream feeding the spmm MXU

    grid = (N_pad // tm, N_pad // tk)

    out_pad = pl.pallas_call(
        sage_kernel,
        out_shape=jax.ShapeDtypeStruct((N_pad, O_pad), jnp.float32),
        grid_spec=pltpu.PrefetchScalarGridSpec(
            num_scalar_prefetch=0,
            grid=grid,
            in_specs=[
                pl.BlockSpec((tm, tk), lambda i, k: (i, k)),      # adj tile (bf16)
                pl.BlockSpec((tm, F), lambda i, k: (i, 0)),       # x rows (f32), per-i resident
                pl.BlockSpec((tk, F), lambda i, k: (k, 0)),       # x k-block (bf16)
                pl.BlockSpec((F, O_pad), lambda i, k: (0, 0)),    # Wx, resident
                pl.BlockSpec((F, O_pad), lambda i, k: (0, 0)),    # Wa, resident
                pl.BlockSpec((1, O_pad), lambda i, k: (0, 0)),    # bias, resident
            ],
            out_specs=pl.BlockSpec((tm, O_pad), lambda i, k: (i, 0)),
            scratch_shapes=[
                pltpu.VMEM((tm, F), jnp.float32),                 # spmm accumulator
                pltpu.VMEM((tm, 1), jnp.float32),                 # row-degree accumulator
            ],
        ),
        compiler_params=pltpu.CompilerParams(
            dimension_semantics=("parallel", "arbitrary")),
    )(adj_pad, x_pad, xk_pad, wx_p, wa_p, b_p)

    return out_pad[:N, :out_feats]


def sage_layer_ref(adj, x, w, b):
    """Pure-JAX f32 reference of the PyTorch forward (mean aggr, no norm/act/residual)."""
    deg = jnp.sum(adj, axis=-1, keepdims=True)
    inv_deg = jnp.where(deg > 0.0, 1.0 / deg, 0.0)
    agg = (adj @ x) * inv_deg
    cat = jnp.concatenate([x, agg], axis=-1)
    return cat @ w.T + b


if __name__ == "__main__":
    key = jax.random.PRNGKey(0)
    k_adj, k_x, k_w, k_b = jax.random.split(key, 4)

    N = 256          # number of nodes (small, but enough for a (2, 2) tiled grid)
    in_feats = 32
    out_feats = 64

    # Deterministic synthetic graph: random sparse 0/1 adjacency + self-loops.
    adj = (jax.random.uniform(k_adj, (N, N)) < 0.05).astype(jnp.float32)
    adj = jnp.maximum(adj, jnp.eye(N, dtype=jnp.float32))

    x = jax.random.normal(k_x, (N, in_feats), dtype=jnp.float32)

    # Deterministic nn.Linear(2*in_feats, out_feats) parameters (torch layout).
    bound = 1.0 / jnp.sqrt(2.0 * in_feats)
    w = jax.random.uniform(k_w, (out_feats, 2 * in_feats),
                           minval=-bound, maxval=bound, dtype=jnp.float32)
    b = jax.random.uniform(k_b, (out_feats,),
                           minval=-bound, maxval=bound, dtype=jnp.float32)

    # One-time parameter prep (split/transpose/lane-pad), then the tiled kernel.
    wx_p, wa_p, b_p, O = prepare_params(w, b)
    out = sage_layer_forward(adj, x, wx_p, wa_p, b_p, out_feats=O, tm=128, tk=128)
    out = jax.block_until_ready(out)

    ref = sage_layer_ref(adj, x, w, b)
    assert out.shape == (N, out_feats)
    # bf16 x-stream in the aggregation path + approx reciprocal -> loosened tolerance.
    assert jnp.allclose(out, ref, atol=2e-2, rtol=2e-2), "mismatch vs reference"

    print("KERNEL_OK")
</pallas_src>

<mosaic_0001>
module attributes {stable_mosaic.version = 11 : i64} {
  func.func @sage_kernel(%arg0: i32, %arg1: i32, %arg2: memref<128x128xbf16, #tpu.memory_space<vmem>>, %arg3: memref<128x32xf32, #tpu.memory_space<vmem>>, %arg4: memref<128x32xbf16, #tpu.memory_space<vmem>>, %arg5: memref<32x128xf32, #tpu.memory_space<vmem>>, %arg6: memref<32x128xf32, #tpu.memory_space<vmem>>, %arg7: memref<1x128xf32, #tpu.memory_space<vmem>>, %arg8: memref<128x128xf32, #tpu.memory_space<vmem>>, %arg9: memref<128x32xf32, #tpu.memory_space<vmem>>, %arg10: memref<128x1xf32, #tpu.memory_space<vmem>>) attributes {dimension_semantics = [#tpu.dimension_semantics<parallel>, #tpu.dimension_semantics<arbitrary>], iteration_bounds = array<i64: 2, 2>, scalar_prefetch = 0 : i64, scratch_operands = 2 : i64, tpu.core_type = #tpu.core_type<tc>, window_params = [{transform_indices = @transform_0, window_bounds = array<i64: 128, 128>}, {transform_indices = @transform_1, window_bounds = array<i64: 128, 32>}, {transform_indices = @transform_2, window_bounds = array<i64: 128, 32>}, {pipeline_mode = #tpu.pipeline_mode<synchronous>, transform_indices = @transform_3, window_bounds = array<i64: 32, 128>}, {pipeline_mode = #tpu.pipeline_mode<synchronous>, transform_indices = @transform_4, window_bounds = array<i64: 32, 128>}, {pipeline_mode = #tpu.pipeline_mode<synchronous>, transform_indices = @transform_5, window_bounds = array<i64: 1, 128>}, {transform_indices = @transform_6, window_bounds = array<i64: 128, 128>}]} {
    %c0_i32 = arith.constant 0 : i32
    %0 = arith.cmpi eq, %arg1, %c0_i32 : i32
    %1 = arith.extui %0 : i1 to i32
    %c0_i32_0 = arith.constant 0 : i32
    %2 = arith.cmpi ne, %1, %c0_i32_0 : i32
    scf.if %2 {
      %cst_14 = arith.constant 0.000000e+00 : f32
      %18 = vector.broadcast %cst_14 : f32 to vector<128x32xf32>
      %c0_15 = arith.constant 0 : index
      %c0_16 = arith.constant 0 : index
      %19 = vector.load %arg9[%c0_15, %c0_16] : memref<128x32xf32, #tpu.memory_space<vmem>>, vector<128x32xf32>
      tpu.vector_store %arg9[%c0_15, %c0_16], %18 {strides = array<i32>} : memref<128x32xf32, #tpu.memory_space<vmem>>, vector<128x32xf32>,
      %cst_17 = arith.constant 0.000000e+00 : f32
      %20 = vector.broadcast %cst_17 : f32 to vector<128x1xf32>
      %c0_18 = arith.constant 0 : index
      %c0_19 = arith.constant 0 : index
      %21 = vector.load %arg10[%c0_18, %c0_19] : memref<128x1xf32, #tpu.memory_space<vmem>>, vector<128x1xf32>
      tpu.vector_store %arg10[%c0_18, %c0_19], %20 {strides = array<i32>} : memref<128x1xf32, #tpu.memory_space<vmem>>, vector<128x1xf32>,
    } else {
    }
    %c0 = arith.constant 0 : index
    %c0_1 = arith.constant 0 : index
    %3 = vector.load %arg2[%c0, %c0_1] : memref<128x128xbf16, #tpu.memory_space<vmem>>, vector<128x128xbf16>
    %c0_2 = arith.constant 0 : index
    %c0_3 = arith.constant 0 : index
    %4 = vector.load %arg10[%c0_2, %c0_3] : memref<128x1xf32, #tpu.memory_space<vmem>>, vector<128x1xf32>
    %5 = arith.extf %3 : vector<128x128xbf16> to vector<128x128xf32>
    %cst = arith.constant dense<0.000000e+00> : vector<128xf32>
    %6 = vector.multi_reduction <add>, %5, %cst [1] : vector<128x128xf32> to vector<128xf32>
    %7 = vector.shape_cast %6 : vector<128xf32> to vector<128x1xf32>
    %8 = arith.addf %4, %7 : vector<128x1xf32>
    %c0_4 = arith.constant 0 : index
    %c0_5 = arith.constant 0 : index
    %9 = vector.load %arg10[%c0_4, %c0_5] : memref<128x1xf32, #tpu.memory_space<vmem>>, vector<128x1xf32>
    tpu.vector_store %arg10[%c0_4, %c0_5], %8 {strides = array<i32>} : memref<128x1xf32, #tpu.memory_space<vmem>>, vector<128x1xf32>,
    %c0_6 = arith.constant 0 : index
    %c0_7 = arith.constant 0 : index
    %10 = vector.load %arg9[%c0_6, %c0_7] : memref<128x32xf32, #tpu.memory_space<vmem>>, vector<128x32xf32>
    %c0_8 = arith.constant 0 : index
    %c0_9 = arith.constant 0 : index
    %11 = vector.load %arg4[%c0_8, %c0_9] : memref<128x32xbf16, #tpu.memory_space<vmem>>, vector<128x32xbf16>
    %cst_10 = arith.constant dense<0.000000e+00> : vector<128x32xf32>
    %12 = tpu.matmul %3, %11, %cst_10 {dimension_numbers = #tpu.dot_dimension_numbers<[1], [0], [0], [1], [0, 0, 1, 1], [], []>} : vector<128x128xbf16>, vector<128x32xbf16>, vector<128x32xf32> -> vector<128x32xf32>
    %13 = arith.addf %10, %12 : vector<128x32xf32>
    %c0_11 = arith.constant 0 : index
    %c0_12 = arith.constant 0 : index
    %14 = vector.load %arg9[%c0_11, %c0_12] : memref<128x32xf32, #tpu.memory_space<vmem>>, vector<128x32xf32>
    tpu.vector_store %arg9[%c0_11, %c0_12], %13 {strides = array<i32>} : memref<128x32xf32, #tpu.memory_space<vmem>>, vector<128x32xf32>,
    %c1_i32 = arith.constant 1 : i32
    %15 = arith.cmpi eq, %arg1, %c1_i32 : i32
    %16 = arith.extui %15 : i1 to i32
    %c0_i32_13 = arith.constant 0 : i32
    %17 = arith.cmpi ne, %16, %c0_i32_13 : i32
    scf.if %17 {
      %c0_14 = arith.constant 0 : index
      %c0_15 = arith.constant 0 : index
      %18 = vector.load %arg10[%c0_14, %c0_15] : memref<128x1xf32, #tpu.memory_space<vmem>>, vector<128x1xf32>
      %cst_16 = arith.constant 0.000000e+00 : f32
      %19 = vector.broadcast %cst_16 : f32 to vector<128x1xf32>
      %20 = arith.cmpf ogt, %18, %19 : vector<128x1xf32>
      %21 = tpu.reciprocal %18 {approx = true} : vector<128x1xf32> -> vector<128x1xf32>
      %cst_17 = arith.constant 0.000000e+00 : f32
      %22 = vector.broadcast %cst_17 : f32 to vector<128x1xf32>
      %23 = arith.select %20, %21, %22 : vector<128x1xi1>, vector<128x1xf32>
      %c0_18 = arith.constant 0 : index
      %c0_19 = arith.constant 0 : index
      %24 = vector.load %arg9[%c0_18, %c0_19] : memref<128x32xf32, #tpu.memory_space<vmem>>, vector<128x32xf32>
      %25 = vector.broadcast %23 : vector<128x1xf32> to vector<128x32xf32>
      %26 = arith.mulf %24, %25 : vector<128x32xf32>
      %c0_20 = arith.constant 0 : index
      %c0_21 = arith.constant 0 : index
      %27 = vector.load %arg3[%c0_20, %c0_21] : memref<128x32xf32, #tpu.memory_space<vmem>>, vector<128x32xf32>
      %c0_22 = arith.constant 0 : index
      %c0_23 = arith.constant 0 : index
      %28 = vector.load %arg5[%c0_22, %c0_23] : memref<32x128xf32, #tpu.memory_space<vmem>>, vector<32x128xf32>
      %cst_24 = arith.constant dense<0.000000e+00> : vector<128x128xf32>
      %29 = tpu.matmul %27, %28, %cst_24 {dimension_numbers = #tpu.dot_dimension_numbers<[1], [0], [0], [1], [0, 0, 1, 1], [], []>} : vector<128x32xf32>, vector<32x128xf32>, vector<128x128xf32> -> vector<128x128xf32>
      %c0_25 = arith.constant 0 : index
      %c0_26 = arith.constant 0 : index
      %30 = vector.load %arg6[%c0_25, %c0_26] : memref<32x128xf32, #tpu.memory_space<vmem>>, vector<32x128xf32>
      %cst_27 = arith.constant dense<0.000000e+00> : vector<128x128xf32>
      %31 = tpu.matmul %26, %30, %cst_27 {dimension_numbers = #tpu.dot_dimension_numbers<[1], [0], [0], [1], [0, 0, 1, 1], [], []>} : vector<128x32xf32>, vector<32x128xf32>, vector<128x128xf32> -> vector<128x128xf32>
      %32 = arith.addf %29, %31 : vector<128x128xf32>
      %c0_28 = arith.constant 0 : index
      %c0_29 = arith.constant 0 : index
      %33 = vector.load %arg7[%c0_28, %c0_29] : memref<1x128xf32, #tpu.memory_space<vmem>>, vector<1x128xf32>
      %34 = vector.broadcast %33 : vector<1x128xf32> to vector<128x128xf32>
      %35 = arith.addf %32, %34 : vector<128x128xf32>
      %c0_30 = arith.constant 0 : index
      %c0_31 = arith.constant 0 : index
      %36 = vector.load %arg8[%c0_30, %c0_31] : memref<128x128xf32, #tpu.memory_space<vmem>>, vector<128x128xf32>
      tpu.vector_store %arg8[%c0_30, %c0_31], %35 {strides = array<i32>} : memref<128x128xf32, #tpu.memory_space<vmem>>, vector<128x128xf32>,
    } else {
    }
    return
  }
  func.func @transform_0(%arg0: i32, %arg1: i32) -> (i32, i32) {
    %c0_i32 = arith.constant 0 : i32
    return %arg0, %arg1 : i32, i32
  }
  func.func @transform_1(%arg0: i32, %arg1: i32) -> (i32, i32) {
    %c0_i32 = arith.constant 0 : i32
    %c0_i32_0 = arith.constant 0 : i32
    return %arg0, %c0_i32 : i32, i32
  }
  func.func @transform_2(%arg0: i32, %arg1: i32) -> (i32, i32) {
    %c0_i32 = arith.constant 0 : i32
    %c0_i32_0 = arith.constant 0 : i32
    return %arg1, %c0_i32 : i32, i32
  }
  func.func @transform_3(%arg0: i32, %arg1: i32) -> (i32, i32) {
    %c0_i32 = arith.constant 0 : i32
    %c0_i32_0 = arith.constant 0 : i32
    %c0_i32_1 = arith.constant 0 : i32
    return %c0_i32, %c0_i32_0 : i32, i32
  }
  func.func @transform_4(%arg0: i32, %arg1: i32) -> (i32, i32) {
    %c0_i32 = arith.constant 0 : i32
    %c0_i32_0 = arith.constant 0 : i32
    %c0_i32_1 = arith.constant 0 : i32
    return %c0_i32, %c0_i32_0 : i32, i32
  }
  func.func @transform_5(%arg0: i32, %arg1: i32) -> (i32, i32) {
    %c0_i32 = arith.constant 0 : i32
    %c0_i32_0 = arith.constant 0 : i32
    %c0_i32_1 = arith.constant 0 : i32
    return %c0_i32, %c0_i32_0 : i32, i32
  }
  func.func @transform_6(%arg0: i32, %arg1: i32) -> (i32, i32) {
    %c0_i32 = arith.constant 0 : i32
    %c0_i32_0 = arith.constant 0 : i32
    return %arg0, %c0_i32 : i32, i32
  }
}

</mosaic_0001>

<bundles_post_ra>
// kernel: tpu_custom_call.1
= control target key start
LH: loop header
LB: loop body
LE: loop exit
PB: predicated region body
PF: predicated region fallthrough
CT: control target
= control target key end

     0   :  { %s2549_s0 = inlined_call_operand.vmem [shape: bf16[256,256], index: 0, kind: input, shape index: {}]   ;;  %s2550_s1 = inlined_call_operand.vmem [shape: f32[256,32], index: 1, kind: input, shape index: {}]   ;;  %s2551_s2 = inlined_call_operand.vmem [shape: bf16[256,32], index: 2, kind: input, shape index: {}]   ;;  %s2552_s3 = inlined_call_operand.vmem [shape: f32[32,128], index: 3, kind: input, shape index: {}]   ;;  %s2553_s4 = inlined_call_operand.vmem [shape: f32[32,128], index: 4, kind: input, shape index: {}]   ;;  %s2554_s5 = inlined_call_operand.vmem [shape: f32[1,128], index: 5, kind: input, shape index: {}]   ;;  %s2555_s6 = inlined_call_operand.hbm [shape: f32[256,128], index: 6, kind: output, shape index: {}]  }
   0x1   :  { %2561 = sst [smem:[#allocation12_spill]] %s2549_s0 }
   0x2   :  { %11 = vsyncpa [#allocation6], 0 }
   0x3   :  { %13 = vsyncpa [#allocation6 + $0x1], 0  ;;  %s2146_s21 = smov 0   ;;  %s2148_s22 = smov 0  }
   0x4   :  { %s2150_s23 = smov 0   ;;  %s2152_s24 = smov 0  }
   0x5   :  { %s2154_s25 = smov 0   ;;  %s2156_s26 = smov 0  }
   0x6   :  { %s2158_s27 = smov 0   ;;  %s2160_s28 = smov 0  }
   0x7   :  { %s2162_s29 = smov 0   ;;  %s2164_s30 = smov 0  }
   0x8 LB: > { %2562 = sst [smem:[#allocation8_spill]] %s2096_s28  ;;  %s1572_s7 = sadd.s32 4294967295, %s2104_s30   ;;  %s2104_s30 = sphi %s2164_s30, %s19_s30   ;;  %s2100_s29 = sphi %s2162_s29, %s2574_s29   ;;  %s2096_s28 = sphi %s2160_s28, %s2573_s28   ;;  %s2092_s27 = sphi %s2158_s27, %s2572_s27   ;;  %s2088_s26 = sphi %s2156_s26, %s2571_s26   ;;  %s2084_s25 = sphi %s2154_s25, %s2579_s25   ;;  %s2080_s24 = sphi %s2152_s24, %s2578_s24   ;;  %s2076_s23 = sphi %s2150_s23, %s2577_s23   ;;  %s2072_s22 = sphi %s2148_s22, %s2576_s22   ;;  %s2068_s21 = sphi %s2146_s21, %s2575_s21  }
   0x9   : > { %2563 = sst [smem:[#allocation9_spill]] %s2100_s29  ;;  %s1573_s8 = sadd.s32 4294967294, %s2104_s30  }
   0xa   : > { %s28_s9 = sadd.s32 1, %s2096_s28  ;;  %s31_s10 = sadd.s32 1, %s2100_s29 }
   0xb   : > { %p29_p0 = scmp.ge.s32.totalorder %s28_s9, 2  ;;  %s40_s11 = sadd.s32 1, %s2084_s25 }
   0xc   : > { %p47_p1 = scmp.ne.s32.totalorder %s2084_s25, %s2080_s24  ;;  %p48_p2 = scmp.eq.s32.totalorder %s2104_s30, 0 }
   0xd   : > { %s2581_s9 = smov (%p29_p0, %s28_s9), 0  ;;  %s2583_s10 = smov (!%p29_p0, %s31_s10), %s2100_s29 }
   0xe   : > { %2564 = sst [smem:[#allocation10_spill]] %s2581_s9  ;;  %s36_s12 = ssub.s32 %s2096_s28, %s2581_s9 }
   0xf   : > { %p2209_p3 = por %p48_p2, %p47_p1  ;;  %p33_p4 = scmp.ge.s32.totalorder %s2583_s10, 2 }
  0x10   : > { %s181_s14 = sadd.s32 1, %s2076_s23  ;;  %p191_p5 = scmp.ne.s32.totalorder %s2076_s23, %s2072_s22 }
  0x11   : > { %p192_p6 = scmp.eq.s32.totalorder %s1572_s7, 3  ;;  %s2585_s10 = smov (%p33_p4, %s2583_s10), 0 }
  0x12   : > { %2566 = sst [smem:[#allocation11_spill]] %s2585_s10  ;;  %p197_p8 = scmp.ne.s32.totalorder %s2072_s22, %s2068_s21 }
  0x13   : > { %p2218_p7 = por %p192_p6, %p191_p5  ;;  %s35_s16 = ssub.s32 %s2100_s29, %s2585_s10 }
  0x14   : > { %p198_p9 = scmp.eq.s32.totalorder %s1573_s8, 3  ;;  %s37_s17 = sor.u32 %s36_s12, %s35_s16 }
  0x15   : > { %p179_p10 = scmp.eq.s32.totalorder %s35_s16, 0  ;;  %p38_p11 = scmp.eq.s32.totalorder %s37_s17, 0 }
  0x16   : > { %p2226_p12 = por %p198_p9, %p197_p8  ;;  %p1575_p13 = scmp.ge.s32.totalorder %s2104_s30, 4 }
  0x17   : > { %s2231_s19 = scalar_select %p179_p10, %s2076_s23, %s181_s14  }
  0x18   : > { %s2234_s20 = scalar_select %p38_p11, %s2084_s25, %s40_s11  }
  0x19   : > { %223 = sbr.rel (%p1575_p13) target bundleno = 52 (0x34), region = 28 }
  0x20   : > { %226 = sbr.rel (!%p2209_p3) target bundleno = 52 (0x34), region = 32  ;;  %s228_s7 = sand.u32 (%p2209_p3), 1, %s2084_s25  }
  0x21   : > { %s1643_s8 = sshll.u32 (%p2209_p3), %s2100_s29, 5  ;;  %s1576_s12 = sshll.u32 (%p2209_p3), %s228_s7, 6 }
  0x22   : > { %s233_s16 = sadd.s32 (%p2209_p3), %s2096_s28, %s1643_s8  ;;  %s2569_s0 = sld [smem:[#allocation12_spill]] (%p2209_p3) }
  0x23   : > { %s1579_s17 = sshll.u32 (%p2209_p3), %s233_s16, 2  ;;  %s230_s11 = scalar_lea.vmem (%p2209_p3), [#allocation4], %s1576_s12 }
  0x28   : > { %s2245_s14 = scalar_lea.vmem %s2569_s0, %s1579_s17 }
  0x29   : > { %v251_v0 = vld [vmem:[%s2245_s14] sm:$0xf]  ;;  %v253_v1 = vld [vmem:[%s2245_s14 + $0x8] sm:$0xf]  ;;  %v255_v2 = vld [vmem:[%s2245_s14 + $0x10] sm:$0xf] }
  0x2a   : > { %252 = vst [vmem:[%s230_s11] sm:$0xf] %v251_v0  ;;  %254 = vst [vmem:[%s230_s11 + $0x4] sm:$0xf] %v253_v1  ;;  %v257_v3 = vld [vmem:[%s2245_s14 + $0x18] sm:$0xf] }
  0x2b   : > { %256 = vst [vmem:[%s230_s11 + $0x8] sm:$0xf] %v255_v2  ;;  %v259_v4 = vld [vmem:[%s2245_s14 + $0x20] sm:$0xf]  ;;  %v261_v5 = vld [vmem:[%s2245_s14 + $0x28] sm:$0xf] }
  0x2c   : > { %258 = vst [vmem:[%s230_s11 + $0xc] sm:$0xf] %v257_v3  ;;  %260 = vst [vmem:[%s230_s11 + $0x10] sm:$0xf] %v259_v4  ;;  %v263_v6 = vld [vmem:[%s2245_s14 + $0x30] sm:$0xf] }
  0x2d   : > { %262 = vst [vmem:[%s230_s11 + $0x14] sm:$0xf] %v261_v5  ;;  %v265_v7 = vld [vmem:[%s2245_s14 + $0x38] sm:$0xf]  ;;  %v267_v8 = vld [vmem:[%s2245_s14 + $0x40] sm:$0xf] }
  0x2e   : > { %264 = vst [vmem:[%s230_s11 + $0x18] sm:$0xf] %v263_v6  ;;  %266 = vst [vmem:[%s230_s11 + $0x1c] sm:$0xf] %v265_v7  ;;  %v269_v9 = vld [vmem:[%s2245_s14 + $0x48] sm:$0xf] }
  0x2f   : > { %268 = vst [vmem:[%s230_s11 + $0x20] sm:$0xf] %v267_v8  ;;  %v271_v10 = vld [vmem:[%s2245_s14 + $0x50] sm:$0xf]  ;;  %v273_v11 = vld [vmem:[%s2245_s14 + $0x58] sm:$0xf] }
  0x30   : > { %270 = vst [vmem:[%s230_s11 + $0x24] sm:$0xf] %v269_v9  ;;  %272 = vst [vmem:[%s230_s11 + $0x28] sm:$0xf] %v271_v10  ;;  %v275_v12 = vld [vmem:[%s2245_s14 + $0x60] sm:$0xf] }
  0x31   : > { %274 = vst [vmem:[%s230_s11 + $0x2c] sm:$0xf] %v273_v11  ;;  %v277_v13 = vld [vmem:[%s2245_s14 + $0x68] sm:$0xf]  ;;  %v279_v14 = vld [vmem:[%s2245_s14 + $0x70] sm:$0xf] }
  0x32   : > { %276 = vst [vmem:[%s230_s11 + $0x30] sm:$0xf] %v275_v12  ;;  %278 = vst [vmem:[%s230_s11 + $0x34] sm:$0xf] %v277_v13  ;;  %v281_v15 = vld [vmem:[%s2245_s14 + $0x78] sm:$0xf] }
  0x33   : > { %280 = vst [vmem:[%s230_s11 + $0x38] sm:$0xf] %v279_v14  ;;  %282 = vst [vmem:[%s230_s11 + $0x3c] sm:$0xf] %v281_v15 }
  0x34 PF: > { %p1580_p0 = scmp.ge.s32.totalorder %s2104_s30, 1  ;;  %p354_p1 = scmp.lt.s32.totalorder %s2104_s30, 5 }
  0x36   : > { %p355_p2 = pnand %p1580_p0, %p354_p1 }
  0x37   : > { %s361_s9 = sand.u32 (!%p355_p2), 1, %s2080_s24   ;;  %s2560_s10 = sand.u32 (!%p355_p2), 1, %s2072_s22  }
  0x38   : > { %358 = sbr.rel (%p355_p2) target bundleno = 738 (0x2e2), region = 81  ;;  %s1581_s13 = sshll.u32 (!%p355_p2), %s361_s9, 6 }
  0x39   : > { %s1582_s7 = sshll.u32 (!%p355_p2), %s2560_s10, 7  ;;  %s1583_s8 = sshll.u32 (!%p355_p2), %s2092_s27, 4 }
  0x3a   : > { %s1585_s12 = sshll.u32 (!%p355_p2), %s2088_s26, 4  ;;  %p402_p3 = scmp.lt.s32.totalorder (!%p355_p2), %s1583_s8, 31 }
  0x3b   : > { %p408_p4 = scmp.lt.s32.totalorder (!%p355_p2), %s1585_s12, 31  ;;  %s2281_s9 = scalar_lea.vmem (!%p355_p2), [#allocation4], %s1581_s13 }
  0x3c   : > { %s2283_s10 = scalar_lea.vmem (!%p355_p2), [#allocation5], %s1582_s7  ;;  %p1587_p5 = scmp.ne.s32.totalorder (!%p355_p2), %s2088_s26, 0 }
  0x3f   : > { %s2587_s8 = smov (!%p402_p3, %s1583_s8), 31  ;;  %s2589_s12 = smov (!%p408_p4, %s1585_s12), 31 }
  0x40   : > { %s1584_s16 = sshll.u32 %s2587_s8, 3  ;;  %s1586_s0 = sshll.u32 %s2589_s12, 2  ;;  %vm419_vm0 = vcmask (!%p1587_p5), 261120   ;;  %vm436_vm1 = vcmask (!%p1587_p5), 7168   ;;  %v2106_v16 = vmov (!%p1587_p5), 0.0  }
  0x41   : > { %s2274_s11 = scalar_lea.vmem %s2550_s1, %s1584_s16  ;;  %s2279_s24 = scalar_lea.vmem %s2551_s2, %s1586_s0  ;;  %420 = vst.msk [vmem:[#allocation2] sm:$0xff] (!%p1587_p5), %vm419_vm0, %v2106_v16  ;;  %421 = vst.msk [vmem:[#allocation2 + $0x8] sm:$0xff] (!%p1587_p5), %vm419_vm0, %v2106_v16 }
  0x42   : > { %418 = sbr.rel (%p1587_p5) target bundleno = 81 (0x51), region = 89  ;;  %422 = vst.msk [vmem:[#allocation2 + $0x10] sm:$0xff] (!%p1587_p5), %vm419_vm0, %v2106_v16  ;;  %423 = vst.msk [vmem:[#allocation2 + $0x18] sm:$0xff] (!%p1587_p5), %vm419_vm0, %v2106_v16 }
  0x43   : > { %424 = vst.msk [vmem:[#allocation2 + $0x20] sm:$0xff] (!%p1587_p5), %vm419_vm0, %v2106_v16  ;;  %425 = vst.msk [vmem:[#allocation2 + $0x28] sm:$0xff] (!%p1587_p5), %vm419_vm0, %v2106_v16 }
  0x44   : > { %426 = vst.msk [vmem:[#allocation2 + $0x30] sm:$0xff] (!%p1587_p5), %vm419_vm0, %v2106_v16  ;;  %427 = vst.msk [vmem:[#allocation2 + $0x38] sm:$0xff] (!%p1587_p5), %vm419_vm0, %v2106_v16 }
  0x45   : > { %428 = vst.msk [vmem:[#allocation2 + $0x40] sm:$0xff] (!%p1587_p5), %vm419_vm0, %v2106_v16  ;;  %429 = vst.msk [vmem:[#allocation2 + $0x48] sm:$0xff] (!%p1587_p5), %vm419_vm0, %v2106_v16 }
  0x46   : > { %430 = vst.msk [vmem:[#allocation2 + $0x50] sm:$0xff] (!%p1587_p5), %vm419_vm0, %v2106_v16  ;;  %431 = vst.msk [vmem:[#allocation2 + $0x58] sm:$0xff] (!%p1587_p5), %vm419_vm0, %v2106_v16 }
  0x47   : > { %432 = vst.msk [vmem:[#allocation2 + $0x60] sm:$0xff] (!%p1587_p5), %vm419_vm0, %v2106_v16  ;;  %433 = vst.msk [vmem:[#allocation2 + $0x68] sm:$0xff] (!%p1587_p5), %vm419_vm0, %v2106_v16 }
  0x48   : > { %434 = vst.msk [vmem:[#allocation2 + $0x70] sm:$0xff] (!%p1587_p5), %vm419_vm0, %v2106_v16  ;;  %435 = vst.msk [vmem:[#allocation2 + $0x78] sm:$0xff] (!%p1587_p5), %vm419_vm0, %v2106_v16 }
  0x49   : > { %437 = vst.msk [vmem:[#allocation3] sm:$0xff] %vm436_vm1, %v2106_v16  ;;  %438 = vst.msk [vmem:[#allocation3 + $0x8] sm:$0xff] %vm436_vm1, %v2106_v16 }
  0x4a   : > { %439 = vst.msk [vmem:[#allocation3 + $0x10] sm:$0xff] %vm436_vm1, %v2106_v16  ;;  %440 = vst.msk [vmem:[#allocation3 + $0x18] sm:$0xff] %vm436_vm1, %v2106_v16 }
  0x4b   : > { %441 = vst.msk [vmem:[#allocation3 + $0x20] sm:$0xff] %vm436_vm1, %v2106_v16  ;;  %442 = vst.msk [vmem:[#allocation3 + $0x28] sm:$0xff] %vm436_vm1, %v2106_v16 }
  0x4c   : > { %443 = vst.msk [vmem:[#allocation3 + $0x30] sm:$0xff] %vm436_vm1, %v2106_v16  ;;  %444 = vst.msk [vmem:[#allocation3 + $0x38] sm:$0xff] %vm436_vm1, %v2106_v16 }
  0x4d   : > { %445 = vst.msk [vmem:[#allocation3 + $0x40] sm:$0xff] %vm436_vm1, %v2106_v16  ;;  %446 = vst.msk [vmem:[#allocation3 + $0x48] sm:$0xff] %vm436_vm1, %v2106_v16 }
  0x4e   : > { %447 = vst.msk [vmem:[#allocation3 + $0x50] sm:$0xff] %vm436_vm1, %v2106_v16  ;;  %448 = vst.msk [vmem:[#allocation3 + $0x58] sm:$0xff] %vm436_vm1, %v2106_v16 }
  0x4f   : > { %449 = vst.msk [vmem:[#allocation3 + $0x60] sm:$0xff] %vm436_vm1, %v2106_v16  ;;  %450 = vst.msk [vmem:[#allocation3 + $0x68] sm:$0xff] %vm436_vm1, %v2106_v16 }
  0x50   : > { %451 = vst.msk [vmem:[#allocation3 + $0x70] sm:$0xff] %vm436_vm1, %v2106_v16  ;;  %452 = vst.msk [vmem:[#allocation3 + $0x78] sm:$0xff] %vm436_vm1, %v2106_v16 }
  0x51 PF: > { %v1936_v17 = vld [vmem:[%s2279_s24] sm:$0xff]   ;;  %v1937_v18 = vld [vmem:[%s2279_s24 + $0x8] sm:$0xff]   ;;  %v1938_v19 = vld [vmem:[%s2279_s24 + $0x10] sm:$0xff]   ;;  %vm549_vm2 = vcmask 7168   ;;  %vm807_vm3 = vcmask 261120   ;;  %p1604_p6 = scmp.ne.s32.totalorder %s2088_s26, 1 }
  0x52   : > { %1701 = vmatprep.subr.bf16.mxu0 %v1936_v17  ;;  %1813 = vmatprep.subr.bf16.mxu1 %v1936_v17  ;;  %v1939_v20 = vld [vmem:[%s2279_s24 + $0x18] sm:$0xff]   ;;  %v453_v21 = vld [vmem:[%s2281_s9] sm:$0xff]   ;;  %v455_v23 = vld [vmem:[%s2281_s9 + $0x8] sm:$0xff]  }
  0x53   : > { %1702 = vmatpush3.bf16.msra.mxu0 %v1936_v17  ;;  %1821 = vmatpush3.bf16.msra.mxu1 %v1936_v17  ;;  %v461_v22 = vld [vmem:[%s2281_s9 + $0x20] sm:$0xff]   ;;  %v487_v24 = vunpack.c.l.bf16 %v455_v23  ;;  %v485_v25 = vunpack.c.l.bf16 %v453_v21  ;;  %v488_v27 = vunpack.c.h.bf16 %v455_v23  ;;  %v486_v28 = vunpack.c.h.bf16 %v453_v21  ;;  %v1941_v29 = vld [vmem:[%s2279_s24 + $0x28] sm:$0xff]   ;;  %v457_v30 = vld [vmem:[%s2281_s9 + $0x10] sm:$0xff]  }
  0x54   : > { %1703 = vmatprep.subr.bf16.mxu0 %v1937_v18  ;;  %1814 = vmatprep.subr.bf16.mxu1 %v1937_v18  ;;  %v1940_v26 = vld [vmem:[%s2279_s24 + $0x20] sm:$0xff]   ;;  %v490_v31 = vunpack.c.h.bf16 %v457_v30  ;;  %v489_v32 = vunpack.c.l.bf16 %v457_v30  ;;  %v1942_v33 = vld [vmem:[%s2279_s24 + $0x30] sm:$0xff]   ;;  %v459_v34 = vld [vmem:[%s2281_s9 + $0x18] sm:$0xff]   ;;  %v494_v38 = vunpack.c.h.bf16 %v461_v22  ;;  %v493_v39 = vunpack.c.l.bf16 %v461_v22 }
  0x55   : > { %1717 = vmatprep.mubr.bf16.mxu0 %v453_v21  ;;  %1725 = vmatprep.mubr.bf16.mxu1 %v461_v22  ;;  %v492_v35 = vunpack.c.h.bf16 %v459_v34  ;;  %v491_v36 = vunpack.c.l.bf16 %v459_v34  ;;  %v1943_v37 = vld [vmem:[%s2279_s24 + $0x38] sm:$0xff]   ;;  %v463_v40 = vld [vmem:[%s2281_s9 + $0x28] sm:$0xff]   ;;  %v465_v41 = vld [vmem:[%s2281_s9 + $0x30] sm:$0xff]  }
  0x56   : > { %505 = vadd.xlane.f32.xlu1 %v487_v24  ;;  %501 = vadd.xlane.f32.xlu0 %v485_v25  ;;  %v496_v42 = vunpack.c.h.bf16 %v463_v40  ;;  %v495_v43 = vunpack.c.l.bf16 %v463_v40  ;;  %v467_v44 = vld [vmem:[%s2281_s9 + $0x38] sm:$0xff]   ;;  %v498_v45 = vunpack.c.h.bf16 %v465_v41  ;;  %v497_v46 = vunpack.c.l.bf16 %v465_v41  ;;  %v471_v49 = vld [vmem:[#allocation3 + $0x10] sm:$0xff]  ;;  %v474_v61 = vld [vmem:[#allocation3 + $0x28] sm:$0xff] }
  0x57   : > { %1704 = vmatpush3.bf16.msra.mxu0 %v1937_v18  ;;  %1822 = vmatpush3.bf16.msra.mxu1 %v1937_v18  ;;  %v500_v47 = vunpack.c.h.bf16 %v467_v44  ;;  %v499_v48 = vunpack.c.l.bf16 %v467_v44  ;;  %v472_v55 = vld [vmem:[#allocation3 + $0x18] sm:$0xff]  ;;  %v473_v62 = vld [vmem:[#allocation3 + $0x20] sm:$0xff]  ;;  %v475_v4 = vld [vmem:[#allocation3 + $0x30] sm:$0xff] }
  0x58   : > { %1705 = vmatprep.subr.bf16.mxu0 %v1938_v19  ;;  %1815 = vmatprep.subr.bf16.mxu1 %v1938_v19  ;;  %v469_v50 = vld [vmem:[#allocation3] sm:$0xff]  ;;  %v470_v56 = vld [vmem:[#allocation3 + $0x8] sm:$0xff]  ;;  %v476_v3 = vld [vmem:[#allocation3 + $0x38] sm:$0xff] }
  0x59   : > { %v478_v9 = vld [vmem:[#allocation3 + $0x48] sm:$0xff]  ;;  %v477_v10 = vld [vmem:[#allocation3 + $0x40] sm:$0xff]  ;;  %v480_v15 = vld [vmem:[#allocation3 + $0x58] sm:$0xff] }
  0x5a   : > { %507 = vadd.xlane.f32.xlu1 %v488_v27  ;;  %503 = vadd.xlane.f32.xlu0 %v486_v28  ;;  %v479_v16 = vld [vmem:[#allocation3 + $0x50] sm:$0xff]  ;;  %v482_v21 = vld [vmem:[#allocation3 + $0x68] sm:$0xff]  ;;  %v481_v22 = vld [vmem:[#allocation3 + $0x60] sm:$0xff] }
  0x5b   : > { %1706 = vmatpush3.bf16.msra.mxu0 %v1938_v19  ;;  %1823 = vmatpush3.bf16.msra.mxu1 %v1938_v19  ;;  %v484_v27 = vld [vmem:[#allocation3 + $0x78] sm:$0xff]  ;;  %v483_v28 = vld [vmem:[#allocation3 + $0x70] sm:$0xff] }
  0x5c   : > { %1707 = vmatprep.subr.bf16.mxu0 %v1939_v20  ;;  %1816 = vmatprep.subr.bf16.mxu1 %v1939_v20 }
  0x5e   : > { %511 = vadd.xlane.f32.xlu1 %v490_v31  ;;  %509 = vadd.xlane.f32.xlu0 %v489_v32 }
  0x5f   : > { %1708 = vmatpush3.bf16.msra.mxu0 %v1939_v20  ;;  %1824 = vmatpush3.bf16.msra.mxu1 %v1939_v20 }
  0x60   : > { %1709 = vmatprep.subr.bf16.mxu0 %v1940_v26  ;;  %1817 = vmatprep.subr.bf16.mxu1 %v1940_v26 }
  0x62   : > { %515 = vadd.xlane.f32.xlu1 %v492_v35  ;;  %513 = vadd.xlane.f32.xlu0 %v491_v36  ;;  %v566_v35 = vld [vmem:[#allocation2] sm:$0xff] }
  0x63   : > { %1710 = vmatpush3.bf16.msra.mxu0 %v1940_v26  ;;  %1825 = vmatpush3.bf16.msra.mxu1 %v1940_v26  ;;  %v574_v36 = vld [vmem:[#allocation2 + $0x40] sm:$0xff] }
  0x64   : > { %1711 = vmatprep.subr.bf16.mxu0 %v1941_v29  ;;  %1818 = vmatprep.subr.bf16.mxu1 %v1941_v29 }
  0x66   : > { %519 = vadd.xlane.f32.xlu1 %v494_v38  ;;  %517 = vadd.xlane.f32.xlu0 %v493_v39  ;;  %v569_v39 = vld [vmem:[#allocation2 + $0x18] sm:$0xff] }
  0x67   : > { %1712 = vmatpush3.bf16.msra.mxu0 %v1941_v29  ;;  %1826 = vmatpush3.bf16.msra.mxu1 %v1941_v29 }
  0x68   : > { %1713 = vmatprep.subr.bf16.mxu0 %v1942_v33  ;;  %1819 = vmatprep.subr.bf16.mxu1 %v1942_v33 }
  0x6a   : > { %523 = vadd.xlane.f32.xlu1 %v496_v42  ;;  %521 = vadd.xlane.f32.xlu0 %v495_v43 }
  0x6b   : > { %1714 = vmatpush3.bf16.msra.mxu0 %v1942_v33  ;;  %1827 = vmatpush3.bf16.msra.mxu1 %v1942_v33  ;;  %v568_v33 = vld [vmem:[#allocation2 + $0x10] sm:$0xff] }
  0x6c   : > { %1715 = vmatprep.subr.bf16.mxu0 %v1943_v37  ;;  %1820 = vmatprep.subr.bf16.mxu1 %v1943_v37 }
  0x6e   : > { %527 = vadd.xlane.f32.xlu1 %v498_v45  ;;  %525 = vadd.xlane.f32.xlu0 %v497_v46  ;;  %v575_v45 = vld [vmem:[#allocation2 + $0x48] sm:$0xff] }
  0x6f   : > { %1716 = vmatpush3.bf16.msra.mxu0 %v1943_v37  ;;  %1828 = vmatpush3.bf16.msra.mxu1 %v1943_v37  ;;  %v567_v46 = vld [vmem:[#allocation2 + $0x8] sm:$0xff] }
  0x72   : > { %1718 = vmatmul.mubr.bf16.vlgmr.msra.gmra.mrb[0].mxu0 %v455_v23  ;;  %1726 = vmatmul.mubr.bf16.vlgmr.msra.gmra.mrb[0].mxu1 %v463_v40  ;;  %v577_v40 = vld [vmem:[#allocation2 + $0x58] sm:$0xff] }
  0x73   : > { %1721 = vmatprep.mubr.bf16.mxu0 %v457_v30  ;;  %1729 = vmatprep.mubr.bf16.mxu1 %v465_v41 }
  0x74   : > { %531 = vadd.xlane.f32.xlu1 %v500_v47  ;;  %529 = vadd.xlane.f32.xlu0 %v499_v48 }
  0x7a   : > { %1722 = vmatmul.mubr.bf16.gmra.mrb[4].mxu0 %v459_v34  ;;  %1730 = vmatmul.mubr.bf16.gmra.mrb[4].mxu1 %v467_v44  ;;  %v576_v34 = vld [vmem:[#allocation2 + $0x50] sm:$0xff] }
  0xe3   : > { %v506_v51 = vpop.xlane.xlu1 %505  ;;  %v502_v52 = vpop.xlane.xlu0 %501 }
  0xe4   : > { %v535_v53 = vadd.f32 %v506_v51, %v471_v49  ;;  %v533_v54 = vadd.f32 %v502_v52, %v469_v50 }
  0xe6   : > { %552 = vst.msk [vmem:[#allocation3 + $0x10] sm:$0xff] %vm549_vm2, %v535_v53  ;;  %550 = vst.msk [vmem:[#allocation3] sm:$0xff] %vm549_vm2, %v533_v54 }
  0xe7   : > { %v508_v57 = vpop.xlane.xlu1 %507  ;;  %v504_v58 = vpop.xlane.xlu0 %503 }
  0xe8   : > { %v536_v59 = vadd.f32 %v508_v57, %v472_v55  ;;  %v534_v60 = vadd.f32 %v504_v58, %v470_v56  ;;  %v572_v57 = vld [vmem:[#allocation2 + $0x30] sm:$0xff] }
  0xe9   : > { %v580_v58 = vld [vmem:[#allocation2 + $0x70] sm:$0xff] }
  0xea   : > { %553 = vst.msk [vmem:[#allocation3 + $0x18] sm:$0xff] %vm549_vm2, %v536_v59  ;;  %551 = vst.msk [vmem:[#allocation3 + $0x8] sm:$0xff] %vm549_vm2, %v534_v60  ;;  %v570_v59 = vld [vmem:[#allocation2 + $0x20] sm:$0xff] }
  0xeb   : > { %v512_v63 = vpop.xlane.xlu1 %511  ;;  %v510_v0 = vpop.xlane.xlu0 %509  ;;  %v578_v60 = vld [vmem:[#allocation2 + $0x60] sm:$0xff] }
  0xec   : > { %v538_v1 = vadd.f32 %v512_v63, %v474_v61  ;;  %v537_v2 = vadd.f32 %v510_v0, %v473_v62  ;;  %v573_v63 = vld [vmem:[#allocation2 + $0x38] sm:$0xff] }
  0xed   : > { %v581_v0 = vld [vmem:[#allocation2 + $0x78] sm:$0xff] }
  0xee   : > { %555 = vst.msk [vmem:[#allocation3 + $0x28] sm:$0xff] %vm549_vm2, %v538_v1  ;;  %554 = vst.msk [vmem:[#allocation3 + $0x20] sm:$0xff] %vm549_vm2, %v537_v2 }
  0xef   : > { %v516_v5 = vpop.xlane.xlu1 %515  ;;  %v514_v6 = vpop.xlane.xlu0 %513 }
  0xf0   : > { %v540_v7 = vadd.f32 %v516_v5, %v476_v3  ;;  %v539_v8 = vadd.f32 %v514_v6, %v475_v4  ;;  %v579_v5 = vld [vmem:[#allocation2 + $0x68] sm:$0xff] }
  0xf1   : > { %v571_v6 = vld [vmem:[#allocation2 + $0x28] sm:$0xff] }
  0xf2   : > { %557 = vst.msk [vmem:[#allocation3 + $0x38] sm:$0xff] %vm549_vm2, %v540_v7  ;;  %556 = vst.msk [vmem:[#allocation3 + $0x30] sm:$0xff] %vm549_vm2, %v539_v8 }
  0xf3   : > { %v520_v11 = vpop.xlane.xlu1 %519  ;;  %v518_v12 = vpop.xlane.xlu0 %517 }
  0xf4   : > { %v542_v13 = vadd.f32 %v520_v11, %v478_v9  ;;  %v541_v14 = vadd.f32 %v518_v12, %v477_v10 }
  0xf6   : > { %559 = vst.msk [vmem:[#allocation3 + $0x48] sm:$0xff] %vm549_vm2, %v542_v13  ;;  %558 = vst.msk [vmem:[#allocation3 + $0x40] sm:$0xff] %vm549_vm2, %v541_v14 }
  0xf7   : > { %v524_v17 = vpop.xlane.xlu1 %523  ;;  %v522_v18 = vpop.xlane.xlu0 %521 }
  0xf8   : > { %v544_v19 = vadd.f32 %v524_v17, %v480_v15  ;;  %v543_v20 = vadd.f32 %v522_v18, %v479_v16  ;;  %v830_v17 = vld [vmem:[#allocation3 + $0x10] sm:$0xff] (!%p1604_p6)  ;;  %v828_v18 = vld [vmem:[#allocation3] sm:$0xff] (!%p1604_p6) }
  0xf9   : > { %1962 = vrcp.f32 (!%p1604_p6), %v830_v17  ;;  %vm846_vm4 = vcmp.gt.f32.partialorder (!%p1604_p6), %v830_v17, 0.0  ;;  %vm844_vm5 = vcmp.gt.f32.partialorder (!%p1604_p6), %v828_v18, 0.0 }
  0xfa   : > { %561 = vst.msk [vmem:[#allocation3 + $0x58] sm:$0xff] %vm549_vm2, %v544_v19  ;;  %560 = vst.msk [vmem:[#allocation3 + $0x50] sm:$0xff] %vm549_vm2, %v543_v20  ;;  %v831_v19 = vld [vmem:[#allocation3 + $0x18] sm:$0xff] (!%p1604_p6)  ;;  %v2107_v20 = vmov (!%p1604_p6), 0   ;;  %1964 = vrcp.f32 (!%p1604_p6), %v828_v18  ;;  %v1013_v18 = vld [vmem:[%s2274_s11 + $0x48] sm:$0xff] (!%p1604_p6) }
  0xfb   : > { %v528_v23 = vpop.xlane.xlu1 %527  ;;  %v526_v24 = vpop.xlane.xlu0 %525  ;;  %1961 = vset.pattern.permute.xlu1 (!%p1604_p6), %v2107_v20  ;;  %1960 = vset.pattern.permute.xlu0 (!%p1604_p6), %v2107_v20  ;;  %1966 = vrcp.f32 (!%p1604_p6), %v831_v19  ;;  %vm847_vm6 = vcmp.gt.f32.partialorder (!%p1604_p6), %v831_v19, 0.0 }
  0xfc   : > { %v546_v25 = vadd.f32 %v528_v23, %v482_v21  ;;  %v545_v26 = vadd.f32 %v526_v24, %v481_v22  ;;  %v829_v21 = vld [vmem:[#allocation3 + $0x8] sm:$0xff] (!%p1604_p6)  ;;  %v2367_v23 = vld [vmem:[#allocation3 + $0x20] sm:$0xff] (!%p1604_p6) }
  0xfd   : > { %v833_v22 = vld [vmem:[#allocation3 + $0x28] sm:$0xff] (!%p1604_p6)  ;;  %1968 = vrcp.f32 (!%p1604_p6), %v829_v21  ;;  %v1020_v24 = vld [vmem:[%s2552_s3] sm:$0xff] (!%p1604_p6)  ;;  %vm845_vm7 = vcmp.gt.f32.partialorder (!%p1604_p6), %v829_v21, 0.0  ;;  %vm848_vm9 = vcmp.gt.f32.partialorder (!%p1604_p6), %v2367_v23, 0.0 }
  0xfe   : > { %563 = vst.msk [vmem:[#allocation3 + $0x68] sm:$0xff] %vm549_vm2, %v546_v25  ;;  %562 = vst.msk [vmem:[#allocation3 + $0x60] sm:$0xff] %vm549_vm2, %v545_v26  ;;  %1970 = vrcp.f32 (!%p1604_p6), %v833_v22  ;;  %v1021_v25 = vld [vmem:[%s2552_s3 + $0x8] sm:$0xff] (!%p1604_p6)  ;;  %v2376_v26 = vld [vmem:[#allocation3 + $0x38] sm:$0xff] (!%p1604_p6)  ;;  %vm849_vm8 = vcmp.gt.f32.partialorder (!%p1604_p6), %v833_v22, 0.0 }
  0xff   : > { %1972 = vrcp.f32 (!%p1604_p6), %v2367_v23  ;;  %vm851_vm10 = vcmp.gt.f32.partialorder (!%p1604_p6), %v2376_v26, 0.0  ;;  %v1014_v22 = vld [vmem:[%s2274_s11 + $0x50] sm:$0xff] (!%p1604_p6) }
 0x100   : > { %1974 = vrcp.f32 (!%p1604_p6), %v2376_v26  ;;  %v1016_v26 = vld [vmem:[%s2274_s11 + $0x60] sm:$0xff] (!%p1604_p6) }
 0x101   : > { %v532_v29 = vpop.xlane.xlu1 %531  ;;  %v530_v30 = vpop.xlane.xlu0 %529 }
 0x102   : > { %v548_v31 = vadd.f32 %v532_v29, %v484_v27  ;;  %v547_v32 = vadd.f32 %v530_v30, %v483_v28  ;;  %v1805_v27 = vpack.c.bf16 (!%p1604_p6), %v1021_v25, %v1020_v24  ;;  %v1024_v28 = vld [vmem:[%s2553_s4] sm:$0xff] (!%p1604_p6)  ;;  %v1025_v29 = vld [vmem:[%s2553_s4 + $0x8] sm:$0xff] (!%p1604_p6)  ;;  %v2384_v30 = vld [vmem:[#allocation3 + $0x30] sm:$0xff] (!%p1604_p6) }
 0x103   : > { %1976 = vrcp.f32 (!%p1604_p6), %v2384_v30  ;;  %vm850_vm11 = vcmp.gt.f32.partialorder (!%p1604_p6), %v2384_v30, 0.0  ;;  %v1015_v24 = vld [vmem:[%s2274_s11 + $0x58] sm:$0xff] (!%p1604_p6) }
 0x104   : > { %565 = vst.msk [vmem:[#allocation3 + $0x78] sm:$0xff] %vm549_vm2, %v548_v31  ;;  %564 = vst.msk [vmem:[#allocation3 + $0x70] sm:$0xff] %vm549_vm2, %v547_v32  ;;  %v1797_v31 = vpack.c.bf16 (!%p1604_p6), %v1025_v29, %v1024_v28  ;;  %1806 = vmatprep.subr.bf16.mxu0 (!%p1604_p6), %v1805_v27  ;;  %v2388_v32 = vld [vmem:[#allocation3 + $0x48] sm:$0xff] (!%p1604_p6)  ;;  %v1018_v28 = vld [vmem:[%s2274_s11 + $0x70] sm:$0xff] (!%p1604_p6) }
 0x105   : > { %1808 = vmatpush3.bf16.msra.mxu0 (!%p1604_p6), %v1805_v27  ;;  %1978 = vrcp.f32 (!%p1604_p6), %v2388_v32  ;;  %vm853_vm12 = vcmp.gt.f32.partialorder (!%p1604_p6), %v2388_v32, 0.0  ;;  %v1017_v27 = vld [vmem:[%s2274_s11 + $0x68] sm:$0xff] (!%p1604_p6)  ;;  %v1019_v29 = vld [vmem:[%s2274_s11 + $0x78] sm:$0xff] (!%p1604_p6) }
 0x106   : > { %1798 = vmatprep.subr.bf16.mxu1 (!%p1604_p6), %v1797_v31 }
 0x107   : > { %1800 = vmatpush3.bf16.msra.mxu1 (!%p1604_p6), %v1797_v31 }
 0x145   : > { %v1719_v37 = vpop.f32.mrb[0].mxu0  ;;  %v1727_v38 = vpop.f32.mrb[0].mxu1 }
 0x146   : > { %v793_v41 = vadd.f32 %v1719_v37, %v568_v33  ;;  %v801_v42 = vadd.f32 %v1727_v38, %v576_v34  ;;  %v728_v43 = vpop.f32.mrb[1].mxu0  ;;  %v760_v44 = vpop.f32.mrb[1].mxu1  ;;  %v2390_v34 = vld [vmem:[#allocation3 + $0x40] sm:$0xff] (!%p1604_p6)  ;;  %v1022_v37 = vld [vmem:[%s2552_s3 + $0x10] sm:$0xff] (!%p1604_p6)  ;;  %v1023_v38 = vld [vmem:[%s2552_s3 + $0x18] sm:$0xff] (!%p1604_p6) }
 0x147   : > { %v791_v47 = vadd.f32 %v728_v43, %v566_v35  ;;  %v799_v48 = vadd.f32 %v760_v44, %v574_v36  ;;  %v1720_v49 = vpop.f32.mrb[2].mxu0  ;;  %v1728_v50 = vpop.f32.mrb[2].mxu1  ;;  %v1027_v43 = vld [vmem:[%s2553_s4 + $0x18] sm:$0xff] (!%p1604_p6)  ;;  %1980 = vrcp.f32 (!%p1604_p6), %v2390_v34  ;;  %vm852_vm13 = vcmp.gt.f32.partialorder (!%p1604_p6), %v2390_v34, 0.0 }
 0x148   : > { %810 = vst.msk [vmem:[#allocation2 + $0x10] sm:$0xff] %vm807_vm3, %v793_v41  ;;  %818 = vst.msk [vmem:[#allocation2 + $0x50] sm:$0xff] %vm807_vm3, %v801_v42  ;;  %v794_v51 = vadd.f32 %v1720_v49, %v569_v39  ;;  %v802_v52 = vadd.f32 %v1728_v50, %v577_v40  ;;  %v763_v53 = vpop.f32.mrb[3].mxu1  ;;  %v731_v54 = vpop.f32.mrb[3].mxu0  ;;  %v1809_v41 = vpack.c.bf16 (!%p1604_p6), %v1023_v38, %v1022_v37  ;;  %v1026_v42 = vld [vmem:[%s2553_s4 + $0x10] sm:$0xff] (!%p1604_p6) }
 0x149   : > { %808 = vst.msk [vmem:[#allocation2] sm:$0xff] %vm807_vm3, %v791_v47  ;;  %816 = vst.msk [vmem:[#allocation2 + $0x40] sm:$0xff] %vm807_vm3, %v799_v48  ;;  %v800_v55 = vadd.f32 %v763_v53, %v575_v45  ;;  %v792_v56 = vadd.f32 %v731_v54, %v567_v46  ;;  %v1963_v33 = vpop.eup (!%p1604_p6), %1962  ;;  %v839_v46 = vld [vmem:[#allocation3 + $0x58] sm:$0xff] (!%p1604_p6)  ;;  %v1801_v47 = vpack.c.bf16 (!%p1604_p6), %v1027_v43, %v1026_v42  ;;  %v838_v50 = vld [vmem:[#allocation3 + $0x50] sm:$0xff] (!%p1604_p6) }
 0x14a   : > { %811 = vst.msk [vmem:[#allocation2 + $0x18] sm:$0xff] %vm807_vm3, %v794_v51  ;;  %819 = vst.msk [vmem:[#allocation2 + $0x58] sm:$0xff] %vm807_vm3, %v802_v52  ;;  %v1965_v35 = vpop.eup (!%p1604_p6), %1964  ;;  %v878_v36 = vsel (!%p1604_p6), %vm846_vm4, %v1963_v33, 0.0  ;;  %1810 = vmatprep.subr.bf16.mxu0 (!%p1604_p6), %v1809_v41  ;;  %1982 = vrcp.f32 (!%p1604_p6), %v839_v46  ;;  %v1004_v52 = vld [vmem:[%s2274_s11] sm:$0xff] (!%p1604_p6)  ;;  %v841_v54 = vld [vmem:[#allocation3 + $0x68] sm:$0xff] (!%p1604_p6)  ;;  %vm855_vm14 = vcmp.gt.f32.partialorder (!%p1604_p6), %v839_v46, 0.0 }
 0x14b   : > { %817 = vst.msk [vmem:[#allocation2 + $0x48] sm:$0xff] %vm807_vm3, %v800_v55  ;;  %809 = vst.msk [vmem:[#allocation2 + $0x8] sm:$0xff] %vm807_vm3, %v792_v56  ;;  %v1967_v39 = vpop.eup (!%p1604_p6), %1966  ;;  %920 = vperm.xlu1 (!%p1604_p6), %1961, %v878_v36   ;;  %v876_v40 = vsel (!%p1604_p6), %vm844_vm5, %v1965_v35, 0.0  ;;  %1802 = vmatprep.subr.bf16.mxu1 (!%p1604_p6), %v1801_v47  ;;  %1984 = vrcp.f32 (!%p1604_p6), %v838_v50  ;;  %v1005_v55 = vld [vmem:[%s2274_s11 + $0x8] sm:$0xff] (!%p1604_p6)  ;;  %vm854_vm15 = vcmp.gt.f32.partialorder (!%p1604_p6), %v838_v50, 0.0  ;;  %vm857_vm0 = vcmp.gt.f32.partialorder (!%p1604_p6), %v841_v54, 0.0 }
 0x14c   : > { %v1969_v44 = vpop.eup (!%p1604_p6), %1968  ;;  %910 = vperm.xlu0 (!%p1604_p6), %1960, %v876_v40   ;;  %v879_v45 = vsel (!%p1604_p6), %vm847_vm6, %v1967_v39, 0.0  ;;  %1812 = vmatpush3.bf16.msra.mxu0 (!%p1604_p6), %v1809_v41  ;;  %1986 = vrcp.f32 (!%p1604_p6), %v841_v54 }
 0x14d   : > { %v1723_v61 = vpop.f32.mrb[4].mxu0  ;;  %v1731_v62 = vpop.f32.mrb[4].mxu1  ;;  %827 = sbr.rel (%p1604_p6) target bundleno = 712 (0x2c8), region = 93  ;;  %v877_v49 = vsel (!%p1604_p6), %vm845_vm7, %v1969_v44, 0.0  ;;  %1804 = vmatpush3.bf16.msra.mxu1 (!%p1604_p6), %v1801_v47  ;;  %1773 = vmatprep.mubr.msk.f32.mxu0 (!%p1604_p6), %vm807_vm3, %v1004_v52 }
 0x14e   : > { %v797_v1 = vadd.f32 %v1723_v61, %v572_v57  ;;  %v805_v2 = vadd.f32 %v1731_v62, %v580_v58  ;;  %v744_v3 = vpop.f32.mrb[5].mxu0  ;;  %v776_v4 = vpop.f32.mrb[5].mxu1  ;;  %v840_v58 = vld [vmem:[#allocation3 + $0x60] sm:$0xff] (!%p1604_p6)  ;;  %v843_v62 = vld [vmem:[#allocation3 + $0x78] sm:$0xff] (!%p1604_p6) }
 0x14f   : > { %v795_v7 = vadd.f32 %v744_v3, %v570_v59  ;;  %v803_v8 = vadd.f32 %v776_v4, %v578_v60  ;;  %v1724_v9 = vpop.f32.mrb[6].mxu0  ;;  %v1732_v10 = vpop.f32.mrb[6].mxu1  ;;  %925 = vperm.xlu1 (!%p1604_p6), %1961, %v879_v45   ;;  %1774 = vmatmul.mubr.msk.f32.vlgmr.msra.gmra.mrb[0].mxu0 (!%p1604_p6), %vm807_vm3, %v1005_v55  ;;  %v1006_v60 = vld [vmem:[%s2274_s11 + $0x10] sm:$0xff] (!%p1604_p6)  ;;  %1988 = vrcp.f32 (!%p1604_p6), %v840_v58  ;;  %v1008_v4 = vld [vmem:[%s2274_s11 + $0x20] sm:$0xff] (!%p1604_p6)  ;;  %vm856_vm1 = vcmp.gt.f32.partialorder (!%p1604_p6), %v840_v58, 0.0 }
 0x150   : > { %814 = vst.msk [vmem:[#allocation2 + $0x30] sm:$0xff] %vm807_vm3, %v797_v1  ;;  %822 = vst.msk [vmem:[#allocation2 + $0x70] sm:$0xff] %vm807_vm3, %v805_v2  ;;  %v798_v11 = vadd.f32 %v1724_v9, %v573_v63  ;;  %v806_v12 = vadd.f32 %v1732_v10, %v581_v0  ;;  %v779_v13 = vpop.f32.mrb[7].mxu1  ;;  %v747_v14 = vpop.f32.mrb[7].mxu0  ;;  %915 = vperm.xlu0 (!%p1604_p6), %1960, %v877_v49   ;;  %1776 = vmatprep.mubr.msk.f32.mxu0 (!%p1604_p6), %vm807_vm3, %v1006_v60  ;;  %v1007_v63 = vld [vmem:[%s2274_s11 + $0x18] sm:$0xff] (!%p1604_p6)  ;;  %v842_v2 = vld [vmem:[#allocation3 + $0x70] sm:$0xff] (!%p1604_p6)  ;;  %1990 = vrcp.f32 (!%p1604_p6), %v843_v62 }
 0x151   : > { %812 = vst.msk [vmem:[#allocation2 + $0x20] sm:$0xff] %vm807_vm3, %v795_v7  ;;  %820 = vst.msk [vmem:[#allocation2 + $0x60] sm:$0xff] %vm807_vm3, %v803_v8  ;;  %v804_v15 = vadd.f32 %v779_v13, %v579_v5  ;;  %v796_v16 = vadd.f32 %v747_v14, %v571_v6  ;;  %v1971_v48 = vpop.eup (!%p1604_p6), %1970  ;;  %1992 = vrcp.f32 (!%p1604_p6), %v842_v2  ;;  %v1009_v6 = vld [vmem:[%s2274_s11 + $0x28] sm:$0xff] (!%p1604_p6)  ;;  %v1010_v10 = vld [vmem:[%s2274_s11 + $0x30] sm:$0xff] (!%p1604_p6)  ;;  %vm859_vm2 = vcmp.gt.f32.partialorder (!%p1604_p6), %v843_v62, 0.0 }
 0x152   : > { %815 = vst.msk [vmem:[#allocation2 + $0x38] sm:$0xff] %vm807_vm3, %v798_v11  ;;  %823 = vst.msk [vmem:[#allocation2 + $0x78] sm:$0xff] %vm807_vm3, %v806_v12  ;;  %v1973_v51 = vpop.eup (!%p1604_p6), %1972  ;;  %v881_v53 = vsel (!%p1604_p6), %vm849_vm8, %v1971_v48, 0.0  ;;  %v1011_v12 = vld [vmem:[%s2274_s11 + $0x38] sm:$0xff] (!%p1604_p6)  ;;  %vm858_vm4 = vcmp.gt.f32.partialorder (!%p1604_p6), %v842_v2, 0.0  ;;  %v892_v30 = vld [vmem:[#allocation2] sm:$0xff] (!%p1604_p6) }
 0x153   : > { %821 = vst.msk [vmem:[#allocation2 + $0x68] sm:$0xff] %vm807_vm3, %v804_v15  ;;  %813 = vst.msk [vmem:[#allocation2 + $0x28] sm:$0xff] %vm807_vm3, %v796_v16  ;;  %v1975_v56 = vpop.eup (!%p1604_p6), %1974  ;;  %v880_v57 = vsel (!%p1604_p6), %vm848_vm9, %v1973_v51, 0.0  ;;  %935 = vperm.xlu1 (!%p1604_p6), %1961, %v881_v53   ;;  %1777 = vmatmul.mubr.msk.f32.gmra.mrb[2].mxu0 (!%p1604_p6), %vm807_vm3, %v1007_v63  ;;  %v1012_v16 = vld [vmem:[%s2274_s11 + $0x40] sm:$0xff] (!%p1604_p6)  ;;  %v894_v33 = vld [vmem:[#allocation2 + $0x10] sm:$0xff] (!%p1604_p6) }
 0x154   : > { %v1977_v59 = vpop.eup %1976  ;;  %930 = vperm.xlu0 %1960, %v880_v57   ;;  %v883_v61 = vsel %vm851_vm10, %v1975_v56, 0.0  ;;  %1779 = vmatprep.mubr.msk.f32.mxu0 %vm807_vm3, %v1008_v4  ;;  %v893_v35 = vld [vmem:[#allocation2 + $0x8] sm:$0xff]  ;;  %v895_v40 = vld [vmem:[#allocation2 + $0x18] sm:$0xff]  ;;  %v900_v53 = vld [vmem:[#allocation2 + $0x40] sm:$0xff] }
 0x155   : > { %v1979_v0 = vpop.eup %1978  ;;  %v882_v1 = vsel %vm850_vm11, %v1977_v59, 0.0  ;;  %v901_v58 = vld [vmem:[#allocation2 + $0x48] sm:$0xff]  ;;  %v902_v59 = vld [vmem:[#allocation2 + $0x50] sm:$0xff] }
 0x156   : > { %v1981_v3 = vpop.eup %1980  ;;  %v885_v5 = vsel %vm853_vm12, %v1979_v0, 0.0  ;;  %v903_v0 = vld [vmem:[#allocation2 + $0x58] sm:$0xff] }
 0x157   : > { %945 = vperm.xlu1 %1961, %v883_v61   ;;  %v1983_v7 = vpop.eup %1982  ;;  %v884_v8 = vsel %vm852_vm13, %v1981_v3, 0.0  ;;  %1780 = vmatmul.mubr.msk.f32.gmra.mrb[4].mxu0 %vm807_vm3, %v1009_v6  ;;  %v898_v47 = vld [vmem:[#allocation2 + $0x30] sm:$0xff] }
 0x158   : > { %940 = vperm.xlu0 %1960, %v882_v1   ;;  %v1985_v9 = vpop.eup %1984  ;;  %v887_v11 = vsel %vm855_vm14, %v1983_v7, 0.0  ;;  %1782 = vmatprep.mubr.msk.f32.mxu0 %vm807_vm3, %v1010_v10  ;;  %v896_v41 = vld [vmem:[#allocation2 + $0x20] sm:$0xff]  ;;  %v906_v7 = vld [vmem:[#allocation2 + $0x70] sm:$0xff] }
 0x159   : > { %v1987_v13 = vpop.eup %1986  ;;  %v886_v14 = vsel %vm854_vm15, %v1985_v9, 0.0  ;;  %v899_v52 = vld [vmem:[#allocation2 + $0x38] sm:$0xff]  ;;  %v904_v1 = vld [vmem:[#allocation2 + $0x60] sm:$0xff] }
 0x15a   : > { %v1989_v15 = vpop.eup %1988  ;;  %v889_v17 = vsel %vm857_vm0, %v1987_v13, 0.0  ;;  %v897_v46 = vld [vmem:[#allocation2 + $0x28] sm:$0xff] }
 0x15b   : > { %955 = vperm.xlu1 %1961, %v885_v5   ;;  %1783 = vmatmul.mubr.msk.f32.gmra.mrb[6].mxu0 %vm807_vm3, %v1011_v12  ;;  %v1991_v19 = vpop.eup %1990  ;;  %v888_v20 = vsel %vm856_vm1, %v1989_v15, 0.0  ;;  %v905_v6 = vld [vmem:[#allocation2 + $0x68] sm:$0xff] }
 0x15c   : > { %950 = vperm.xlu0 %1960, %v884_v8   ;;  %1785 = vmatprep.mubr.msk.f32.mxu0 %vm807_vm3, %v1012_v16  ;;  %v1993_v21 = vpop.eup %1992  ;;  %v891_v23 = vsel %vm859_vm2, %v1991_v19, 0.0 }
 0x15d   : > { %v890_v25 = vsel %vm858_vm4, %v1993_v21, 0.0 }
 0x15f   : > { %965 = vperm.xlu1 %1961, %v887_v11   ;;  %1786 = vmatmul.mubr.msk.f32.gmra.mrb[8].mxu0 %vm807_vm3, %v1013_v18  ;;  %v907_v11 = vld [vmem:[#allocation2 + $0x78] sm:$0xff] }
 0x160   : > { %960 = vperm.xlu0 %1960, %v886_v14   ;;  %1788 = vmatprep.mubr.msk.f32.mxu0 %vm807_vm3, %v1014_v22 }
 0x163   : > { %975 = vperm.xlu1 %1961, %v889_v17   ;;  %1789 = vmatmul.mubr.msk.f32.gmra.mrb[10].mxu0 %vm807_vm3, %v1015_v24 }
 0x164   : > { %970 = vperm.xlu0 %1960, %v888_v20   ;;  %1791 = vmatprep.mubr.msk.f32.mxu0 %vm807_vm3, %v1016_v26 }
 0x167   : > { %985 = vperm.xlu1 %1961, %v891_v23   ;;  %1792 = vmatmul.mubr.msk.f32.gmra.mrb[12].mxu0 %vm807_vm3, %v1017_v27 }
 0x168   : > { %980 = vperm.xlu0 %1960, %v890_v25   ;;  %1794 = vmatprep.mubr.msk.f32.mxu0 %vm807_vm3, %v1018_v28 }
 0x16b   : > { %1795 = vmatmul.mubr.msk.f32.gmra.mrb[14].mxu0 %vm807_vm3, %v1019_v29 }
 0x1ca   : > { %v921_v31 = vpop.permute.xlu1 %920 }
 0x1cb   : > { %v911_v32 = vpop.permute.xlu0 %910  ;;  %v990_v37 = vmul.f32 %v921_v31, %v894_v33  ;;  %v1637_v31 = vld [vmem:[%s2554_s5] ss:$0 sm:$0xff] }
 0x1cc   : > { %v988_v34 = vmul.f32 %v911_v32, %v892_v30 }
 0x1ce   : > { %1741 = vmatprep.mubr.msk.f32.mxu1 %vm807_vm3, %v988_v34  ;;  %v926_v36 = vpop.permute.xlu1 %925 }
 0x1cf   : > { %v916_v38 = vpop.permute.xlu0 %915  ;;  %v991_v44 = vmul.f32 %v926_v36, %v895_v40 }
 0x1d0   : > { %v989_v39 = vmul.f32 %v916_v38, %v893_v35 }
 0x1d2   : > { %1742 = vmatmul.mubr.msk.f32.vlgmr.msra.gmra.mrb[0].mxu1 %vm807_vm3, %v989_v39  ;;  %v936_v42 = vpop.permute.xlu1 %935 }
 0x1d3   : > { %1744 = vmatprep.mubr.msk.f32.mxu1 %vm807_vm3, %v990_v37  ;;  %v931_v43 = vpop.permute.xlu0 %930  ;;  %v993_v50 = vmul.f32 %v936_v42, %v897_v46 }
 0x1d4   : > { %v992_v45 = vmul.f32 %v931_v43, %v896_v41 }
 0x1d6   : > { %1745 = vmatmul.mubr.msk.f32.gmra.mrb[2].mxu1 %vm807_vm3, %v991_v44  ;;  %v946_v48 = vpop.permute.xlu1 %945 }
 0x1d7   : > { %1747 = vmatprep.mubr.msk.f32.mxu1 %vm807_vm3, %v992_v45  ;;  %v941_v49 = vpop.permute.xlu0 %940  ;;  %v995_v56 = vmul.f32 %v946_v48, %v899_v52 }
 0x1d8   : > { %v994_v51 = vmul.f32 %v941_v49, %v898_v47 }
 0x1da   : > { %1748 = vmatmul.mubr.msk.f32.gmra.mrb[4].mxu1 %vm807_vm3, %v993_v50  ;;  %v956_v54 = vpop.permute.xlu1 %955 }
 0x1db   : > { %1750 = vmatprep.mubr.msk.f32.mxu1 %vm807_vm3, %v994_v51  ;;  %v951_v55 = vpop.permute.xlu0 %950  ;;  %v997_v62 = vmul.f32 %v956_v54, %v901_v58 }
 0x1dc   : > { %v996_v57 = vmul.f32 %v951_v55, %v900_v53 }
 0x1de   : > { %1751 = vmatmul.mubr.msk.f32.gmra.mrb[6].mxu1 %vm807_vm3, %v995_v56  ;;  %v966_v60 = vpop.permute.xlu1 %965 }
 0x1df   : > { %1753 = vmatprep.mubr.msk.f32.mxu1 %vm807_vm3, %v996_v57  ;;  %v961_v61 = vpop.permute.xlu0 %960  ;;  %v999_v4 = vmul.f32 %v966_v60, %v903_v0 }
 0x1e0   : > { %v998_v63 = vmul.f32 %v961_v61, %v902_v59 }
 0x1e2   : > { %1754 = vmatmul.mubr.msk.f32.gmra.mrb[8].mxu1 %vm807_vm3, %v997_v62  ;;  %v976_v2 = vpop.permute.xlu1 %975 }
 0x1e3   : > { %1756 = vmatprep.mubr.msk.f32.mxu1 %vm807_vm3, %v998_v63  ;;  %v971_v3 = vpop.permute.xlu0 %970  ;;  %v1001_v9 = vmul.f32 %v976_v2, %v905_v6 }
 0x1e4   : > { %v1000_v5 = vmul.f32 %v971_v3, %v904_v1 }
 0x1e6   : > { %1757 = vmatmul.mubr.msk.f32.gmra.mrb[10].mxu1 %vm807_vm3, %v999_v4  ;;  %v986_v12 = vpop.permute.xlu1 %985 }
 0x1e7   : > { %1759 = vmatprep.mubr.msk.f32.mxu1 %vm807_vm3, %v1000_v5  ;;  %v981_v8 = vpop.permute.xlu0 %980  ;;  %v1003_v13 = vmul.f32 %v986_v12, %v907_v11 }
 0x1e8   : > { %v1002_v10 = vmul.f32 %v981_v8, %v906_v7 }
 0x1ea   : > { %1760 = vmatmul.mubr.msk.f32.gmra.mrb[12].mxu1 %vm807_vm3, %v1001_v9 }
 0x1eb   : > { %1762 = vmatprep.mubr.msk.f32.mxu1 %vm807_vm3, %v1002_v10 }
 0x1ee   : > { %1763 = vmatmul.mubr.msk.f32.gmra.mrb[14].mxu1 %vm807_vm3, %v1003_v13 }
 0x222   : > { %v1775_v14 = vpop.f32.mrb[0].mxu0 }
 0x223   : > { %v1335_v15 = vpop.f32.mrb[1].mxu0 }
 0x226   : > { %v1778_v16 = vpop.f32.mrb[2].mxu0 }
 0x227   : > { %v1345_v17 = vpop.f32.mrb[3].mxu0 }
 0x22a   : > { %v1781_v18 = vpop.f32.mrb[4].mxu0 }
 0x22b   : > { %v1355_v19 = vpop.f32.mrb[5].mxu0 }
 0x22e   : > { %v1784_v20 = vpop.f32.mrb[6].mxu0 }
 0x22f   : > { %v1365_v21 = vpop.f32.mrb[7].mxu0 }
 0x232   : > { %v1787_v22 = vpop.f32.mrb[8].mxu0 }
 0x233   : > { %v1375_v23 = vpop.f32.mrb[9].mxu0 }
 0x236   : > { %v1790_v24 = vpop.f32.mrb[10].mxu0 }
 0x237   : > { %v1385_v25 = vpop.f32.mrb[11].mxu0 }
 0x23a   : > { %v1793_v26 = vpop.f32.mrb[12].mxu0 }
 0x23b   : > { %v1395_v27 = vpop.f32.mrb[13].mxu0 }
 0x23e   : > { %v1796_v28 = vpop.f32.mrb[14].mxu0 }
 0x23f   : > { %v1405_v29 = vpop.f32.mrb[15].mxu0 }
 0x2a5   : > { %v1743_v30 = vpop.f32.mrb[0].mxu1 }
 0x2a6   : > { %v1341_v32 = vadd.f32 %v1775_v14, %v1743_v30  ;;  %v1142_v33 = vpop.f32.mrb[1].mxu1 }
 0x2a7   : > { %v1336_v34 = vadd.f32 %v1335_v15, %v1142_v33 }
 0x2a8   : > { %v1422_v35 = vadd.f32 %v1637_v31, %v1341_v32 }
 0x2a9   : > { %v1421_v36 = vadd.f32 %v1637_v31, %v1336_v34  ;;  %v1746_v37 = vpop.f32.mrb[2].mxu1 }
 0x2aa   : > { %1438 = vst [vmem:[%s2283_s10 + $0x8] sm:$0xff] %v1422_v35  ;;  %v1351_v38 = vadd.f32 %v1778_v16, %v1746_v37  ;;  %v1152_v39 = vpop.f32.mrb[3].mxu1 }
 0x2ab   : > { %1437 = vst [vmem:[%s2283_s10] sm:$0xff] %v1421_v36  ;;  %v1346_v40 = vadd.f32 %v1345_v17, %v1152_v39 }
 0x2ac   : > { %v1424_v41 = vadd.f32 %v1637_v31, %v1351_v38 }
 0x2ad   : > { %v1423_v42 = vadd.f32 %v1637_v31, %v1346_v40  ;;  %v1749_v43 = vpop.f32.mrb[4].mxu1 }
 0x2ae   : > { %1440 = vst [vmem:[%s2283_s10 + $0x18] sm:$0xff] %v1424_v41  ;;  %v1361_v44 = vadd.f32 %v1781_v18, %v1749_v43  ;;  %v1162_v45 = vpop.f32.mrb[5].mxu1 }
 0x2af   : > { %1439 = vst [vmem:[%s2283_s10 + $0x10] sm:$0xff] %v1423_v42  ;;  %v1356_v46 = vadd.f32 %v1355_v19, %v1162_v45 }
 0x2b0   : > { %v1426_v47 = vadd.f32 %v1637_v31, %v1361_v44 }
 0x2b1   : > { %v1425_v48 = vadd.f32 %v1637_v31, %v1356_v46  ;;  %v1752_v49 = vpop.f32.mrb[6].mxu1 }
 0x2b2   : > { %1442 = vst [vmem:[%s2283_s10 + $0x28] sm:$0xff] %v1426_v47  ;;  %v1371_v50 = vadd.f32 %v1784_v20, %v1752_v49  ;;  %v1172_v51 = vpop.f32.mrb[7].mxu1 }
 0x2b3   : > { %1441 = vst [vmem:[%s2283_s10 + $0x20] sm:$0xff] %v1425_v48  ;;  %v1366_v52 = vadd.f32 %v1365_v21, %v1172_v51 }
 0x2b4   : > { %v1428_v53 = vadd.f32 %v1637_v31, %v1371_v50 }
 0x2b5   : > { %v1427_v54 = vadd.f32 %v1637_v31, %v1366_v52  ;;  %v1755_v55 = vpop.f32.mrb[8].mxu1 }
 0x2b6   : > { %1444 = vst [vmem:[%s2283_s10 + $0x38] sm:$0xff] %v1428_v53  ;;  %v1381_v56 = vadd.f32 %v1787_v22, %v1755_v55  ;;  %v1182_v57 = vpop.f32.mrb[9].mxu1 }
 0x2b7   : > { %1443 = vst [vmem:[%s2283_s10 + $0x30] sm:$0xff] %v1427_v54  ;;  %v1376_v58 = vadd.f32 %v1375_v23, %v1182_v57 }
 0x2b8   : > { %v1430_v59 = vadd.f32 %v1637_v31, %v1381_v56 }
 0x2b9   : > { %v1429_v60 = vadd.f32 %v1637_v31, %v1376_v58  ;;  %v1758_v61 = vpop.f32.mrb[10].mxu1 }
 0x2ba   : > { %1446 = vst [vmem:[%s2283_s10 + $0x48] sm:$0xff] %v1430_v59  ;;  %v1391_v62 = vadd.f32 %v1790_v24, %v1758_v61  ;;  %v1192_v63 = vpop.f32.mrb[11].mxu1 }
 0x2bb   : > { %1445 = vst [vmem:[%s2283_s10 + $0x40] sm:$0xff] %v1429_v60  ;;  %v1386_v0 = vadd.f32 %v1385_v25, %v1192_v63 }
 0x2bc   : > { %v1432_v1 = vadd.f32 %v1637_v31, %v1391_v62 }
 0x2bd   : > { %v1431_v2 = vadd.f32 %v1637_v31, %v1386_v0  ;;  %v1761_v3 = vpop.f32.mrb[12].mxu1 }
 0x2be   : > { %1448 = vst [vmem:[%s2283_s10 + $0x58] sm:$0xff] %v1432_v1  ;;  %v1401_v4 = vadd.f32 %v1793_v26, %v1761_v3  ;;  %v1202_v5 = vpop.f32.mrb[13].mxu1 }
 0x2bf   : > { %1447 = vst [vmem:[%s2283_s10 + $0x50] sm:$0xff] %v1431_v2  ;;  %v1396_v6 = vadd.f32 %v1395_v27, %v1202_v5 }
 0x2c0   : > { %v1434_v7 = vadd.f32 %v1637_v31, %v1401_v4 }
 0x2c1   : > { %v1433_v8 = vadd.f32 %v1637_v31, %v1396_v6  ;;  %v1764_v9 = vpop.f32.mrb[14].mxu1 }
 0x2c2   : > { %1450 = vst [vmem:[%s2283_s10 + $0x68] sm:$0xff] %v1434_v7  ;;  %v1411_v10 = vadd.f32 %v1796_v28, %v1764_v9  ;;  %v1212_v11 = vpop.f32.mrb[15].mxu1 }
 0x2c3   : > { %1449 = vst [vmem:[%s2283_s10 + $0x60] sm:$0xff] %v1433_v8  ;;  %v1406_v12 = vadd.f32 %v1405_v29, %v1212_v11 }
 0x2c4   : > { %v1436_v13 = vadd.f32 %v1637_v31, %v1411_v10 }
 0x2c5   : > { %v1435_v14 = vadd.f32 %v1637_v31, %v1406_v12 }
 0x2c6   : > { %1452 = vst [vmem:[%s2283_s10 + $0x78] sm:$0xff] %v1436_v13 }
 0x2c7   : > { %1451 = vst [vmem:[%s2283_s10 + $0x70] sm:$0xff] %v1435_v14 }
 0x2c8 PF: > { %s1644_s13 = sshll.u32 %s2092_s27, 11  ;;  %s1467_s16 = sshll.u32 %s2283_s10, 4  ;;  %s2487_s16 = int_to_ptr.vmem [resolvable:$true] %s1467_s16 }
 0x2c9   : > { %s2484_s12 = scalar_lea.hbm %s2555_s6, %s1644_s13  ;;  %s2570_s17 = sand.u32 1, %s2072_s22  }
 0x2ca   : > { %s2491_s14 = scalar_lea.sflag [#allocation6], %s2570_s17  ;;  %s1994_s24 = scalar_lea.vmem %s2487_s16, 2048 }
 0x2cb   : > { %p1995_p8 = scmp.ne.s32.totalorder %s2487_s16, %s1994_s24  ;;  %s2108_s27 = smov [#allocation5]  }
 0x2cc   : > { %s1998_s9 = sshll.u32 %s2108_s27, 4  ;;  %s1999_s9 = int_to_ptr.vmem [resolvable:$false] %s1998_s9 }
 0x2cd   : > { %p1996_p9 = pnand %p1995_p8, %p2218_p7  ;;  %s2000_s0 = scalar_lea.vmem %s1999_s9, 4096 }
 0x2ce   : > { %p2001_p11 = scmp.lt.s32.totalorder %s2487_s16, %s1999_s9  ;;  %p2002_p13 = scmp.lt.s32.totalorder %s2000_s0, %s1994_s24 }
 0x2cf   : > { %p1997_p10 = pneg %p1996_p9 }
 0x2d0   : > { %p2003_p0 = por %p2002_p13, %p2001_p11 }
 0x2d2   : > { %p2004_p1 = pnand %p2003_p0, %p1997_p10 }
 0x2d4   : > { %2007 = shalt.err (!%p2004_p1)
}
 0x2d5   : > { %s2008_s10 = scalar_lea.hbm %s2484_s12, 2048  ;;  %s2012_s11 = scalar_lea.hbm %s2555_s6, 4096 }
 0x2d6   : > { %p2009_p2 = scmp.ne.s32.totalorder %s2484_s12, %s2008_s10  ;;  %p2013_p5 = scmp.lt.u32.totalorder %s2484_s12, %s2555_s6 }
 0x2d7   : > { %p2014_p6 = scmp.lt.u32.totalorder %s2012_s11, %s2008_s10  ;;  %p2016_p9 = scmp.lt.u32.totalorder %s2008_s10, %s2484_s12 }
 0x2d8   : > { %p2010_p3 = pnand %p2009_p2, %p2218_p7 }
 0x2d9   : > { %p2015_p8 = por %p2014_p6, %p2013_p5 }
 0x2da   : > { %p2011_p4 = pneg %p2010_p3 }
 0x2db   : > { %p2017_p10 = por %p2016_p9, %p2015_p8 }
 0x2dd   : > { %p2018_p11 = pnand %p2017_p10, %p2011_p4 }
 0x2df   : > { %2021 = shalt.err (!%p2018_p11)
}
 0x2e0   : > { %s2109_s7 = smov 128   ;;  %s2110_s8 = smov 8  }
 0x2e1   : > { %1845 = dma.vmem_to_hbm [thread:$0]  (%p2218_p7), %s2487_s16, 2048, %s2484_s12, %s2491_s14, %s2109_s7, %s2109_s7, %s2110_s8  }
 0x2e2 PF: > { %p1851_p13 = scmp.ge.s32.totalorder %s2104_s30, 2  ;;  %s1482_s17 = sand.u32 1, %s2068_s21  }
 0x2e3   : > { %s1483_s24 = scalar_lea.sflag [#allocation6], %s1482_s17 }
 0x2e4   : > { %p1848_p0 = pnand %p1851_p13, %p2226_p12 }
 0x2e6   : > { %2063 = dma.done.wait (!%p1848_p0), %s1483_s24, 2048  }
 0x2e7   : > { %2065 = vsyncadd (!%p1848_p0), %s1483_s24, 4294965248  ;;  %s19_s30 = sadd.s32 1, %s2104_s30   ;;  %s2571_s26 = sld [smem:[#allocation8_spill]] }
 0x2e8   : > { %p16_p1 = scmp.ge.s32.totalorder %s19_s30, 6   ;;  %s2572_s27 = sld [smem:[#allocation9_spill]] }
 0x2e9   : > { %s2573_s28 = sld [smem:[#allocation10_spill]]  ;;  %s2574_s29 = sld [smem:[#allocation11_spill]] }
 0x2ea   : > { %s2575_s21 = smov %s2072_s22  ;;  %s2576_s22 = smov %s2076_s23 }
 0x2eb   : > { %s2577_s23 = smov %s2231_s19  ;;  %s2578_s24 = smov %s2084_s25 }
 0x2ec   : > { %s2579_s25 = smov %s2234_s20  ;;  %18 = sbr.rel (!%p16_p1) target bundleno = 8 (0x8), region = 139 }
 0x2f3   :  { %1488 = vsyncpa [#allocation6], 1 }
 0x2f4   :  { %1490 = vsyncpa [#allocation6 + $0x1], 1 }

</bundles_post_ra>
